<compile_context>
chip_gen: v6e
topology: v6e:2x2x1
jax: 0.10.0
libtpu: 0.0.40
codegen_flags: <defaults>
</compile_context>

<pallas_src>
import jax
import jax.numpy as jnp
from jax.experimental import pallas as pl
from jax.experimental.pallas import tpu as pltpu


def _round_up(n, m):
    return ((n + m - 1) // m) * m


def _nbytes(shape, itemsize):
    n = 1
    for s in shape:
        n *= s
    return int(n * itemsize)


def _pick_hidden_tile(F, tf):
    """Largest 128-aligned divisor of F that is <= tf (fallback: any divisor, then F)."""
    if F <= tf:
        return F
    d = (tf // 128) * 128
    while d >= 128:
        if F % d == 0:
            return d
        d -= 128
    for d in range(tf, 0, -1):
        if F % d == 0:
            return d
    return F


# ---------------------------------------------------------------------------
# Kernels
# ---------------------------------------------------------------------------
def ff_kernel_resident(x_ref, w1_ref, b1_ref, w2_ref, b2_ref, o_ref):
    # Full weight set resident in VMEM; one fused fc1 -> ReLU -> fc2 per M tile.
    x = x_ref[...].astype(w1_ref.dtype)                     # f32 -> bf16 cast in VMEM
    h = jnp.dot(x, w1_ref[...], preferred_element_type=jnp.float32)
    h = jnp.maximum(h + b1_ref[...], 0.0)
    # dropout == identity (eval mode)
    out = jnp.dot(h.astype(w2_ref.dtype), w2_ref[...],
                  preferred_element_type=jnp.float32)
    o_ref[...] = (out + b2_ref[...]).astype(o_ref.dtype)


def ff_kernel_blocked_out_acc(x_ref, w1_ref, b1_ref, w2_ref, b2_ref, o_ref):
    # F-blocked; accumulate fc2 partials directly into the f-invariant f32 output
    # block (VMEM-resident across the F axis), no separate scratch.
    f = pl.program_id(1)

    @pl.when(f == 0)
    def _():
        o_ref[...] = jnp.zeros_like(o_ref)

    x = x_ref[...].astype(w1_ref.dtype)
    h = jnp.dot(x, w1_ref[...], preferred_element_type=jnp.float32)
    h = jnp.maximum(h + b1_ref[...], 0.0)
    # dropout == identity (eval mode)
    o_ref[...] += jnp.dot(h.astype(w2_ref.dtype), w2_ref[...],
                          preferred_element_type=jnp.float32)

    @pl.when(f == pl.num_programs(1) - 1)
    def _():
        o_ref[...] += b2_ref[...]


def ff_kernel_blocked_scratch(x_ref, w1_ref, b1_ref, w2_ref, b2_ref, o_ref, acc_ref):
    # F-blocked with an f32 VMEM accumulator (used when the output dtype is not f32).
    f = pl.program_id(1)

    @pl.when(f == 0)
    def _():
        acc_ref[...] = jnp.zeros_like(acc_ref)

    x = x_ref[...].astype(w1_ref.dtype)
    h = jnp.dot(x, w1_ref[...], preferred_element_type=jnp.float32)
    h = jnp.maximum(h + b1_ref[...], 0.0)
    # dropout == identity (eval mode)
    acc_ref[...] += jnp.dot(h.astype(w2_ref.dtype), w2_ref[...],
                            preferred_element_type=jnp.float32)

    @pl.when(f == pl.num_programs(1) - 1)
    def _():
        o_ref[...] = (acc_ref[...] + b2_ref[...]).astype(o_ref.dtype)


# ---------------------------------------------------------------------------
# Wrapper
# ---------------------------------------------------------------------------
def feed_forward(x, w1, b1, w2, b2, *, tm=1024, tf=512, compute_dtype=jnp.bfloat16):
    """Fused FeedForward forward pass (eval mode).

    x : (..., E)
    w1: (E, F), b1: (F,), w2: (F, E), b2: (E,)
    (weights stored pre-transposed relative to PyTorch's (out, in) Linear layout;
     callers should store w1/w2 pre-cast to `compute_dtype` to avoid a per-call
     HBM cast pass.)
    """
    *lead, E = x.shape
    F = w1.shape[1]
    assert w1.shape == (E, F) and w2.shape == (F, E)
    assert b1.shape == (F,) and b2.shape == (E,)

    out_dtype = x.dtype
    x2d = x.reshape(-1, E)
    M = x2d.shape[0]

    w_isz = jnp.dtype(compute_dtype).itemsize
    x_isz = jnp.dtype(x2d.dtype).itemsize
    o_isz = jnp.dtype(out_dtype).itemsize

    # --- Generation-aware VMEM cap (~80% of physical; fallback covers v7x's 64 MiB).
    try:
        phys_vmem = int(pltpu.get_tpu_info().vmem_capacity_bytes)
    except Exception:
        phys_vmem = 64 * 1024 * 1024
    vmem_cap = int(phys_vmem * 0.80)

    # --- Hidden-dim (F) tiling: keep the whole weight set VMEM-resident when it fits
    # (double-buffered), so each weight element is read from HBM exactly once.
    weight_bytes = 2 * E * F * w_isz          # W1 + W2 in compute_dtype
    if 2 * weight_bytes <= vmem_cap // 2:     # 2x for double buffers, half cap for acts
        tf_eff = F
    else:
        tf_eff = _pick_hidden_tile(F, tf)

    # --- Row (M) tiling.
    row_align = 16                            # bf16 packs 16 sublanes per vreg
    tm_eff = min(tm, _round_up(M, row_align))

    def vmem_needed(tm_b, tf_b):
        io = (_nbytes((tm_b, E), x_isz)       # x tile (f32, cast in VMEM)
              + _nbytes((E, tf_b), w_isz)     # W1 block
              + _nbytes((8, tf_b), 4)         # b1 (sublane-padded)
              + _nbytes((tf_b, E), w_isz)     # W2 block
              + _nbytes((8, E), 4)            # b2 (sublane-padded)
              + _nbytes((tm_b, E), o_isz))    # output tile
        scratch = (_nbytes((tm_b, E), w_isz)        # x bf16 cast
                   + _nbytes((tm_b, tf_b), 4)       # h in f32
                   + _nbytes((tm_b, tf_b), w_isz))  # h bf16 cast
        if out_dtype != jnp.float32 and tf_b != F:
            scratch += _nbytes((tm_b, E), 4)        # f32 accumulator scratch
        return 2 * io + scratch + (2 << 20)         # double buffers + headroom

    while tm_eff > row_align and vmem_needed(tm_eff, tf_eff) > vmem_cap:
        tm_eff = _round_up(max(tm_eff // 2, row_align), row_align)

    M_pad = _round_up(M, tm_eff)

    # v7x has 2 TensorCores: keep >=2 M tiles when M is big enough so the "parallel"
    # axis can actually be sharded across cores.
    if M >= 256 and M_pad // tm_eff < 2:
        tm_eff = _round_up((M + 1) // 2, row_align)
        M_pad = 2 * tm_eff

    if M_pad != M:
        x2d = jnp.pad(x2d, ((0, M_pad - M), (0, 0)))

    # Weights: cast only if the caller did not store them pre-cast.
    w1c = w1 if w1.dtype == compute_dtype else w1.astype(compute_dtype)
    w2c = w2 if w2.dtype == compute_dtype else w2.astype(compute_dtype)
    b1_2d = b1.reshape(1, F).astype(jnp.float32)
    b2_2d = b2.reshape(1, E).astype(jnp.float32)

    m_tiles = M_pad // tm_eff
    f_tiles = F // tf_eff

    # Advisory cost estimate for XLA's scheduler.
    weight_hbm = 2 * E * F * w_isz * (1 if f_tiles == 1 else m_tiles)
    cost = pl.CostEstimate(
        flops=4 * M_pad * E * F,
        transcendentals=0,
        bytes_accessed=int(M_pad * E * (x_isz + o_isz) + weight_hbm + 4 * (F + E)))

    vmem_bytes = int(min(max(vmem_needed(tm_eff, tf_eff), 32 * 1024 * 1024), vmem_cap))

    if f_tiles == 1:
        kernel = ff_kernel_resident
        grid = (m_tiles,)
        in_specs = [
            pl.BlockSpec((tm_eff, E), lambda i: (i, 0)),   # x row tile
            pl.BlockSpec((E, F), lambda i: (0, 0)),        # W1 (grid-invariant)
            pl.BlockSpec((1, F), lambda i: (0, 0)),        # b1
            pl.BlockSpec((F, E), lambda i: (0, 0)),        # W2 (grid-invariant)
            pl.BlockSpec((1, E), lambda i: (0, 0)),        # b2
        ]
        out_specs = pl.BlockSpec((tm_eff, E), lambda i: (i, 0))
        scratch_shapes = ()
        dims = ("parallel",)
    else:
        in_specs = [
            pl.BlockSpec((tm_eff, E), lambda i, f: (i, 0)),   # x row tile
            pl.BlockSpec((E, tf_eff), lambda i, f: (0, f)),   # W1 column block
            pl.BlockSpec((1, tf_eff), lambda i, f: (0, f)),   # b1 block
            pl.BlockSpec((tf_eff, E), lambda i, f: (f, 0)),   # W2 row block
            pl.BlockSpec((1, E), lambda i, f: (0, 0)),        # b2 (grid-invariant)
        ]
        out_specs = pl.BlockSpec((tm_eff, E), lambda i, f: (i, 0))
        grid = (m_tiles, f_tiles)
        dims = ("parallel", "arbitrary")
        if out_dtype == jnp.float32:
            kernel = ff_kernel_blocked_out_acc
            scratch_shapes = ()
        else:
            kernel = ff_kernel_blocked_scratch
            scratch_shapes = (pltpu.VMEM((tm_eff, E), jnp.float32),)

    out_padded = pl.pallas_call(
        kernel,
        out_shape=jax.ShapeDtypeStruct((M_pad, E), out_dtype),
        grid_spec=pltpu.PrefetchScalarGridSpec(
            num_scalar_prefetch=0,
            grid=grid,
            in_specs=in_specs,
            out_specs=out_specs,
            scratch_shapes=scratch_shapes,
        ),
        compiler_params=pltpu.CompilerParams(
            dimension_semantics=dims,
            vmem_limit_bytes=vmem_bytes,
        ),
        cost_estimate=cost,
    )(x2d, w1c, b1_2d, w2c, b2_2d)

    return out_padded[:M].reshape(*lead, E)


if __name__ == "__main__":
    # Small shapes consistent with the module: batch=2, seq=8, embedding_dim=32, ff_dim=128
    B, S, E, FF = 2, 8, 32, 128
    key = jax.random.PRNGKey(0)
    k_x, k_w1, k_b1, k_w2, k_b2 = jax.random.split(key, 5)

    x = jax.random.normal(k_x, (B, S, E), dtype=jnp.float32)
    # Weights are stored pre-cast to bf16 (the recommended usage; avoids a per-call
    # HBM cast pass in the wrapper).
    w1 = (jax.random.normal(k_w1, (E, FF), dtype=jnp.float32) * 0.05).astype(jnp.bfloat16)
    b1 = jax.random.normal(k_b1, (FF,), dtype=jnp.float32) * 0.05
    w2 = (jax.random.normal(k_w2, (FF, E), dtype=jnp.float32) * 0.05).astype(jnp.bfloat16)
    b2 = jax.random.normal(k_b2, (E,), dtype=jnp.float32) * 0.05

    out = feed_forward(x, w1, b1, w2, b2)
    jax.block_until_ready(out)

    # Reference using the same bf16-matmul / f32-accumulate dtype path.
    x2d = x.reshape(B * S, E)
    xb = x2d.astype(jnp.bfloat16)
    h = jnp.maximum(jnp.dot(xb, w1, preferred_element_type=jnp.float32) + b1, 0.0)
    ref = jnp.dot(h.astype(jnp.bfloat16), w2, preferred_element_type=jnp.float32) + b2

    err = float(jnp.max(jnp.abs(out.reshape(B * S, E) - ref)))
    assert jnp.allclose(out.reshape(B * S, E), ref, atol=2e-3, rtol=2e-3), err

    print("KERNEL_OK")
</pallas_src>

<mosaic_0001>
module attributes {stable_mosaic.version = 11 : i64} {
  func.func @ff_kernel_resident(%arg0: i32, %arg1: memref<16x32xf32, #tpu.memory_space<vmem>>, %arg2: memref<32x128xbf16, #tpu.memory_space<vmem>>, %arg3: memref<1x128xf32, #tpu.memory_space<vmem>>, %arg4: memref<128x32xbf16, #tpu.memory_space<vmem>>, %arg5: memref<1x32xf32, #tpu.memory_space<vmem>>, %arg6: memref<16x32xf32, #tpu.memory_space<vmem>>) attributes {dimension_semantics = [#tpu.dimension_semantics<parallel>], iteration_bounds = array<i64: 1>, scalar_prefetch = 0 : i64, scratch_operands = 0 : i64, tpu.core_type = #tpu.core_type<tc>, window_params = [{transform_indices = @transform_0, window_bounds = array<i64: 16, 32>}, {pipeline_mode = #tpu.pipeline_mode<synchronous>, transform_indices = @transform_1, window_bounds = array<i64: 32, 128>}, {pipeline_mode = #tpu.pipeline_mode<synchronous>, transform_indices = @transform_2, window_bounds = array<i64: 1, 128>}, {pipeline_mode = #tpu.pipeline_mode<synchronous>, transform_indices = @transform_3, window_bounds = array<i64: 128, 32>}, {pipeline_mode = #tpu.pipeline_mode<synchronous>, transform_indices = @transform_4, window_bounds = array<i64: 1, 32>}, {transform_indices = @transform_5, window_bounds = array<i64: 16, 32>}]} {
    %c0 = arith.constant 0 : index
    %c0_0 = arith.constant 0 : index
    %0 = vector.load %arg1[%c0, %c0_0] : memref<16x32xf32, #tpu.memory_space<vmem>>, vector<16x32xf32>
    %1 = arith.truncf %0 : vector<16x32xf32> to vector<16x32xbf16>
    %c0_1 = arith.constant 0 : index
    %c0_2 = arith.constant 0 : index
    %2 = vector.load %arg2[%c0_1, %c0_2] : memref<32x128xbf16, #tpu.memory_space<vmem>>, vector<32x128xbf16>
    %cst = arith.constant dense<0.000000e+00> : vector<16x128xf32>
    %3 = tpu.matmul %1, %2, %cst {dimension_numbers = #tpu.dot_dimension_numbers<[1], [0], [0], [1], [0, 0, 1, 1], [], []>} : vector<16x32xbf16>, vector<32x128xbf16>, vector<16x128xf32> -> vector<16x128xf32>
    %c0_3 = arith.constant 0 : index
    %c0_4 = arith.constant 0 : index
    %4 = vector.load %arg3[%c0_3, %c0_4] : memref<1x128xf32, #tpu.memory_space<vmem>>, vector<1x128xf32>
    %5 = vector.broadcast %4 : vector<1x128xf32> to vector<16x128xf32>
    %6 = arith.addf %3, %5 : vector<16x128xf32>
    %cst_5 = arith.constant 0.000000e+00 : f32
    %7 = vector.broadcast %cst_5 : f32 to vector<16x128xf32>
    %8 = arith.maximumf %6, %7 : vector<16x128xf32>
    %9 = arith.truncf %8 : vector<16x128xf32> to vector<16x128xbf16>
    %c0_6 = arith.constant 0 : index
    %c0_7 = arith.constant 0 : index
    %10 = vector.load %arg4[%c0_6, %c0_7] : memref<128x32xbf16, #tpu.memory_space<vmem>>, vector<128x32xbf16>
    %cst_8 = arith.constant dense<0.000000e+00> : vector<16x32xf32>
    %11 = tpu.matmul %9, %10, %cst_8 {dimension_numbers = #tpu.dot_dimension_numbers<[1], [0], [0], [1], [0, 0, 1, 1], [], []>} : vector<16x128xbf16>, vector<128x32xbf16>, vector<16x32xf32> -> vector<16x32xf32>
    %c0_9 = arith.constant 0 : index
    %c0_10 = arith.constant 0 : index
    %12 = vector.load %arg5[%c0_9, %c0_10] : memref<1x32xf32, #tpu.memory_space<vmem>>, vector<1x32xf32>
    %13 = vector.broadcast %12 : vector<1x32xf32> to vector<16x32xf32>
    %14 = arith.addf %11, %13 : vector<16x32xf32>
    %c0_11 = arith.constant 0 : index
    %c0_12 = arith.constant 0 : index
    %15 = vector.load %arg6[%c0_11, %c0_12] : memref<16x32xf32, #tpu.memory_space<vmem>>, vector<16x32xf32>
    tpu.vector_store %arg6[%c0_11, %c0_12], %14 {strides = array<i32>} : memref<16x32xf32, #tpu.memory_space<vmem>>, vector<16x32xf32>,
    return
  }
  func.func @transform_0(%arg0: i32) -> (i32, i32) {
    %c0_i32 = arith.constant 0 : i32
    %c0_i32_0 = arith.constant 0 : i32
    return %arg0, %c0_i32 : i32, i32
  }
  func.func @transform_1(%arg0: i32) -> (i32, i32) {
    %c0_i32 = arith.constant 0 : i32
    %c0_i32_0 = arith.constant 0 : i32
    %c0_i32_1 = arith.constant 0 : i32
    return %c0_i32, %c0_i32_0 : i32, i32
  }
  func.func @transform_2(%arg0: i32) -> (i32, i32) {
    %c0_i32 = arith.constant 0 : i32
    %c0_i32_0 = arith.constant 0 : i32
    %c0_i32_1 = arith.constant 0 : i32
    return %c0_i32, %c0_i32_0 : i32, i32
  }
  func.func @transform_3(%arg0: i32) -> (i32, i32) {
    %c0_i32 = arith.constant 0 : i32
    %c0_i32_0 = arith.constant 0 : i32
    %c0_i32_1 = arith.constant 0 : i32
    return %c0_i32, %c0_i32_0 : i32, i32
  }
  func.func @transform_4(%arg0: i32) -> (i32, i32) {
    %c0_i32 = arith.constant 0 : i32
    %c0_i32_0 = arith.constant 0 : i32
    %c0_i32_1 = arith.constant 0 : i32
    return %c0_i32, %c0_i32_0 : i32, i32
  }
  func.func @transform_5(%arg0: i32) -> (i32, i32) {
    %c0_i32 = arith.constant 0 : i32
    %c0_i32_0 = arith.constant 0 : i32
    return %arg0, %c0_i32 : i32, i32
  }
}

</mosaic_0001>

<bundles_post_ra>
// kernel: tpu_custom_call.1
= control target key start
LH: loop header
LB: loop body
LE: loop exit
PB: predicated region body
PF: predicated region fallthrough
CT: control target
= control target key end

     0   :  { %v316_v1 = vmov 0.0   ;;  %vm317_vm0 = vmmov 0   ;;  %vm48_vm1 = vcmask 261120   ;;  %s399_s0 = inlined_call_operand.vmem [shape: f32[16,32], index: 0, kind: input, shape index: {}]   ;;  %s400_s1 = inlined_call_operand.vmem [shape: bf16[32,128], index: 1, kind: input, shape index: {}]   ;;  %s401_s2 = inlined_call_operand.vmem [shape: f32[1,128], index: 2, kind: input, shape index: {}]   ;;  %s402_s3 = inlined_call_operand.vmem [shape: bf16[128,32], index: 3, kind: input, shape index: {}]   ;;  %s403_s4 = inlined_call_operand.vmem [shape: f32[1,32], index: 4, kind: input, shape index: {}]   ;;  %s404_s5 = inlined_call_operand.hbm [shape: f32[16,32], index: 5, kind: output, shape index: {}]  }
   0x1   :  { %v284_v0 = vld [vmem:[%s400_s1 + $0x8] sm:$0xff]   ;;  %251 = vmatprep.subr.bf16.mxu0 %v316_v1  ;;  %v285_v2 = vld [vmem:[%s400_s1] sm:$0xff]   ;;  %259 = vmatprep.subr.bf16.mxu1 %v316_v1  ;;  %v286_v5 = vld [vmem:[%s402_s3 + $0x38] sm:$0xff]  }
   0x2   :  { %252 = vmatpush3.bf16.msra.mxu0 %v284_v0  ;;  %255 = vmatprep.mubr.msk.bf16.mxu0 %vm317_vm0, %v316_v1  ;;  %v22_v3 = vld [vmem:[%s399_s0] sm:$0xff]  ;;  %v23_v4 = vld [vmem:[%s399_s0 + $0x8] sm:$0xff]  ;;  %v287_v7 = vld [vmem:[%s402_s3 + $0x30] sm:$0xff]  }
   0x3   :  { %253 = vmatprep.subr.bf16.mxu0 %v316_v1  ;;  %275 = vmatprep.mubr.msk.bf16.mxu1 %vm317_vm0, %v316_v1  ;;  %v24_v6 = vpack.c.bf16 %v23_v4, %v22_v3  ;;  %v288_v8 = vld [vmem:[%s402_s3 + $0x28] sm:$0xff]  }
   0x4   :  { %260 = vmatpush3.bf16.msra.mxu1 %v286_v5 }
   0x5   :  { %261 = vmatprep.subr.bf16.mxu1 %v316_v1 }
   0x6   :  { %254 = vmatpush3.bf16.msra.mxu0 %v285_v2 }
   0x8   :  { %262 = vmatpush3.bf16.msra.mxu1 %v287_v7 }
   0x9   :  { %256 = vmatmul.mubr.msk.bf16.vlgmr.msra.gmra.mxu0 %vm48_vm1, %v24_v6  ;;  %263 = vmatprep.subr.bf16.mxu1 %v316_v1 }
   0xa   :  { %10 = vsyncpa [#allocation3], 0  ;;  %v289_v9 = vld [vmem:[%s402_s3 + $0x20] sm:$0xff]   ;;  %v290_v10 = vld [vmem:[%s402_s3 + $0x18] sm:$0xff]  }
   0xb   :  { %v291_v11 = vld [vmem:[%s402_s3 + $0x10] sm:$0xff]   ;;  %v292_v12 = vld [vmem:[%s402_s3 + $0x8] sm:$0xff]   ;;  %v293_v13 = vld [vmem:[%s402_s3] sm:$0xff]   ;;  %s318_s3 = smov [#allocation2]  }
   0xc   :  { %264 = vmatpush3.bf16.msra.mxu1 %v288_v8  ;;  %v226_v14 = vld [vmem:[%s401_s2] ss:$0 sm:$0xff]  ;;  %s215_s19 = sshll.u32 %s318_s3, 4  ;;  %s216_s19 = int_to_ptr.vmem [resolvable:$true] %s215_s19 }
   0xd   :  { %265 = vmatprep.subr.bf16.mxu1 %v316_v1  ;;  %v230_v24 = vld [vmem:[%s403_s4] ss:$0 sm:$0xff]  ;;  %s294_s2 = scalar_lea.vmem %s216_s19, 256  ;;  %p299_p1 = scmp.lt.s32.totalorder %s216_s19, %s216_s19 }
   0xe   :  { %p295_p0 = scmp.ne.s32.totalorder %s216_s19, %s294_s2  ;;  %p300_p2 = scmp.lt.s32.totalorder %s294_s2, %s294_s2 }
  0x10   :  { %266 = vmatpush3.bf16.msra.mxu1 %v289_v9  ;;  %p301_p3 = por %p300_p2, %p299_p1 }
  0x11   :  { %267 = vmatprep.subr.bf16.mxu1 %v316_v1 }
  0x12   :  { %p302_p4 = pnand %p301_p3, %p295_p0 }
  0x14   :  { %268 = vmatpush3.bf16.msra.mxu1 %v290_v10 }
  0x15   :  { %269 = vmatprep.subr.bf16.mxu1 %v316_v1 }
  0x18   :  { %270 = vmatpush3.bf16.msra.mxu1 %v291_v11 }
  0x19   :  { %271 = vmatprep.subr.bf16.mxu1 %v316_v1 }
  0x1c   :  { %272 = vmatpush3.bf16.msra.mxu1 %v292_v12 }
  0x1d   :  { %273 = vmatprep.subr.bf16.mxu1 %v316_v1 }
  0x20   :  { %274 = vmatpush3.bf16.msra.mxu1 %v293_v13 }
  0xc9   :  { %v86_v15 = vpop.f32.mrf.mxu0 }
  0xca   :  { %v87_v17 = vadd.f32 %v226_v14, %v86_v15 }
  0xcb   :  { %v257_v16 = vpop.f32.mrf.mxu0 }
  0xcc   :  { %v93_v21 = vmax.f32 %v87_v17, 0.0 }
  0xcd   :  { %v89_v18 = vpop.f32.mrf.mxu0 }
  0xce   :  { %v90_v19 = vadd.f32 %v226_v14, %v89_v18 }
  0xcf   :  { %v258_v20 = vpop.f32.mrf.mxu0 }
  0xd0   :  { %v94_v22 = vmax.f32 %v90_v19, 0.0 }
  0xd2   :  { %v95_v23 = vpack.c.bf16 %v94_v22, %v93_v21 }
  0xd4   :  { %276 = vmatmul.mubr.bf16.vlgmr.msra.gmra.mxu1 %v95_v23 }
 0x194   :  { %v201_v25 = vpop.f32.mrf.mxu1 }
 0x195   :  { %v202_v26 = vadd.f32 %v230_v24, %v201_v25 }
 0x196   :  { %v277_v27 = vpop.f32.mrf.mxu1 }
 0x197   :  { %208 = vst.msk [vmem:[#allocation2] sm:$0xff] %vm48_vm1, %v202_v26 }
 0x198   :  { %v204_v28 = vpop.f32.mrf.mxu1 }
 0x199   :  { %v205_v29 = vadd.f32 %v230_v24, %v204_v28 }
 0x19a   :  { %v278_v30 = vpop.f32.mrf.mxu1 }
 0x19b   :  { %209 = vst.msk [vmem:[#allocation2 + $0x8] sm:$0xff] %vm48_vm1, %v205_v29 }
 0x19c   :  { %305 = shalt.err (!%p302_p4)
}
 0x19d   :  { %s319_s4 = smov 128   ;;  %s320_s20 = smov 8  }
 0x19e   :  { %221 = dma.vmem_to_hbm [thread:$0]  %s216_s19, 256, %s404_s5, [#allocation3], %s319_s4, %s319_s4, %s320_s20  }
 0x19f   :  { %314 = dma.done.wait [#allocation3], 256  }
 0x1a0   :  { %315 = vsyncadd [#allocation3], 4294967040 }
 0x1a1   :  { %225 = vsyncpa [#allocation3], 1 }

</bundles_post_ra>
